<compile_context>
chip_gen: v5e
topology: v5e:2x2
jax: 0.10.0
libtpu: 0.0.40
codegen_flags: <defaults>
</compile_context>

<pallas_src>
import jax
import jax.numpy as jnp
from jax import lax
from jax.experimental import pallas as pl
from jax.experimental.pallas import tpu as pltpu
from typing import NamedTuple

_NEG_BIG = -1e30  # finite "-inf" for padded vocab lanes (bias stays f32)


def _round_up(x, m):
    return ((x + m - 1) // m) * m


def _vmem_budget_bytes():
    """Scoped-VMEM limit: physical capacity minus headroom.

    v5e/v6e (128 MiB) -> 112 MiB, v7x (64 MiB) -> 48 MiB."""
    try:
        cap = int(pltpu.get_tpu_info().vmem_capacity_bytes)
    except Exception:
        cap = 64 * 1024 * 1024
    return max(32 * 1024 * 1024, cap - 16 * 1024 * 1024)


def _pick_n_tile(n_rows):
    n_tile = min(256, _round_up(max(n_rows, 16), 16))   # multiple of 16 for bf16 rows
    # v7x megacore: make sure the "parallel" N axis has >= 2 grid steps whenever
    # there is enough work for two tiles, so both TensorCores are used.
    if n_rows >= 32 and _round_up(n_rows, n_tile) // n_tile < 2:
        n_tile = max(16, _round_up((n_rows + 1) // 2, 16))
    return n_tile


def _pick_v_tile(embed, vocab, logits_bytes, compute_bytes, budget, n_tile=256):
    """Largest 128-aligned V tile whose double-buffered DMAs fit the VMEM budget."""
    v_full = _round_up(vocab, 128)
    v_tile = min(128, v_full)
    for cand in (256, 512, 1024, 2048, 4096, 8192, 16384):
        if cand > v_full:
            break
        need = (2 * n_tile * cand * logits_bytes      # logits out, double-buffered
                + 2 * embed * cand * compute_bytes    # W tile, double-buffered
                + 2 * cand * 4                        # f32 bias tile
                + 2 * n_tile * embed * compute_bytes  # emb tile
                + 16 * n_tile * 4                     # lse / target-logit / scratch
                + (2 << 20))                          # compiler slack
        if need <= (budget * 3) // 4:
            v_tile = cand
    return v_tile


# ------------------------------ kernels -------------------------------------


def _logits_kernel(emb_ref, w_ref, b_ref, logits_ref):
    """Inference path: logits tile = emb @ W_tile + bias_tile."""
    acc = jnp.dot(emb_ref[...], w_ref[...], preferred_element_type=jnp.float32)
    logits_ref[...] = (acc + b_ref[...]).astype(logits_ref.dtype)


def _online_update(logits, tgt_col, j, m_sc, l_sc, tl_ref):
    """Online logsumexp update + in-kernel target-logit accumulation (all f32)."""
    m_prev = m_sc[...]
    m_new = jnp.maximum(m_prev, jnp.max(logits, axis=-1, keepdims=True))
    alpha = jnp.exp(m_prev - m_new)
    l_sc[...] = alpha * l_sc[...] + jnp.sum(jnp.exp(logits - m_new),
                                            axis=-1, keepdims=True)
    m_sc[...] = m_new
    n_t, v_t = logits.shape
    col = lax.broadcasted_iota(jnp.int32, (n_t, v_t), 1) + j * v_t
    hit = col == tgt_col                       # exactly one hit per row over all V tiles
    tl_ref[...] += jnp.sum(jnp.where(hit, logits, 0.0), axis=-1, keepdims=True)


def _train_kernel(emb_ref, w_ref, b_ref, tgt_ref,
                  logits_ref, lse_ref, tl_ref, m_sc, l_sc):
    """Training path: logits tile + streaming logsumexp + target-logit gather."""
    j = pl.program_id(1)

    @pl.when(j == 0)
    def _():
        m_sc[...] = jnp.full_like(m_sc, -jnp.inf)
        l_sc[...] = jnp.zeros_like(l_sc)
        tl_ref[...] = jnp.zeros_like(tl_ref)

    logits = jnp.dot(emb_ref[...], w_ref[...],
                     preferred_element_type=jnp.float32) + b_ref[...]
    logits_ref[...] = logits.astype(logits_ref.dtype)
    _online_update(logits, tgt_ref[...], j, m_sc, l_sc, tl_ref)

    @pl.when(j == pl.num_programs(1) - 1)
    def _():
        lse_ref[...] = m_sc[...] + jnp.log(l_sc[...])


def _loss_only_kernel(emb_ref, w_ref, b_ref, tgt_ref,
                      lse_ref, tl_ref, m_sc, l_sc):
    """Training path without the logits HBM writeback (loss-only consumers)."""
    j = pl.program_id(1)

    @pl.when(j == 0)
    def _():
        m_sc[...] = jnp.full_like(m_sc, -jnp.inf)
        l_sc[...] = jnp.zeros_like(l_sc)
        tl_ref[...] = jnp.zeros_like(tl_ref)

    logits = jnp.dot(emb_ref[...], w_ref[...],
                     preferred_element_type=jnp.float32) + b_ref[...]
    _online_update(logits, tgt_ref[...], j, m_sc, l_sc, tl_ref)

    @pl.when(j == pl.num_programs(1) - 1)
    def _():
        lse_ref[...] = m_sc[...] + jnp.log(l_sc[...])


# ------------------------------ wrapper --------------------------------------


class BigramParams(NamedTuple):
    token_table: jax.Array   # (V, E) f32 embedding table
    w_pad: jax.Array         # (E, V_pad) compute dtype, zero-padded vocab columns
    bias_pad: jax.Array      # (1, V_pad) f32, padded vocab columns = -1e30
    vocab: int
    v_tile: int
    compute_dtype: object


def prepare_bigram_params(token_table, w, bias, *, v_tile=None,
                          compute_dtype=jnp.bfloat16):
    """One-time weight prep (done at init, not per step): transpose, pad V to a
    v_tile multiple, cast the matmul operand to bf16, keep bias in f32."""
    V, E = token_table.shape
    assert w.shape == (V, E) and bias.shape == (V,)
    assert compute_dtype in (jnp.bfloat16, jnp.float32), \
        "fp16 would overflow the -1e30 vocab-pad guard"
    if v_tile is None:
        v_tile = _pick_v_tile(E, V, logits_bytes=4,
                              compute_bytes=jnp.dtype(compute_dtype).itemsize,
                              budget=_vmem_budget_bytes())
    v_tile = max(128, _round_up(int(v_tile), 128))
    v_tile = min(v_tile, _round_up(V, 128))
    V_pad = _round_up(V, v_tile)
    assert V_pad - V < v_tile            # padding never fills an entire V tile
    # Note: E is deliberately NOT padded to 128 (kernel is HBM-bound, not MXU-bound).
    w_pad = jnp.pad(w.T.astype(jnp.float32),
                    ((0, 0), (0, V_pad - V))).astype(compute_dtype)
    bias_pad = jnp.pad(bias.astype(jnp.float32).reshape(1, V),
                       ((0, 0), (0, V_pad - V)), constant_values=_NEG_BIG)
    return BigramParams(token_table.astype(jnp.float32), w_pad, bias_pad,
                        int(V), int(v_tile), compute_dtype)


def bigram_forward(params, input_seq, predictions=None, *,
                   return_logits=True, n_tile=None, logits_dtype=jnp.float32):
    """Pallas equivalent of BigramModel.forward.

    input_seq:   (B, T) int32 token ids
    predictions: optional (B, T) int32 targets
    Returns (logits, loss):
      predictions None     -> ((B, T, V) logits, None)
      predictions given    -> ((B*T, V) logits or None, scalar mean CE loss)
    """
    B, T = input_seq.shape
    V, E = params.token_table.shape
    V_pad = params.w_pad.shape[1]
    v_tile = params.v_tile
    N = B * T

    # Real gather in the wrapper (replaces a one-hot matmul).
    ids = input_seq.reshape(N).astype(jnp.int32)
    emb = jnp.take(params.token_table, ids, axis=0)                # (N, E) f32

    if n_tile is None:
        n_tile = _pick_n_tile(N)
    n_tile = max(8, _round_up(int(n_tile), 8))
    N_pad = _round_up(N, n_tile)
    grid = (N_pad // n_tile, V_pad // v_tile)
    vmem_limit = _vmem_budget_bytes()

    emb_p = jnp.pad(emb, ((0, N_pad - N), (0, 0))).astype(params.compute_dtype)

    emb_spec = pl.BlockSpec((n_tile, E), lambda i, j: (i, 0))
    w_spec = pl.BlockSpec((E, v_tile), lambda i, j: (0, j))
    b_spec = pl.BlockSpec((1, v_tile), lambda i, j: (0, j))
    logits_spec = pl.BlockSpec((n_tile, v_tile), lambda i, j: (i, j))
    row_spec = pl.BlockSpec((n_tile, 1), lambda i, j: (i, 0))

    if predictions is None:
        logits_pad = pl.pallas_call(
            _logits_kernel,
            out_shape=jax.ShapeDtypeStruct((N_pad, V_pad), logits_dtype),
            grid_spec=pltpu.PrefetchScalarGridSpec(
                num_scalar_prefetch=0, grid=grid,
                in_specs=[emb_spec, w_spec, b_spec],
                out_specs=logits_spec),
            compiler_params=pltpu.CompilerParams(
                dimension_semantics=("parallel", "parallel"),
                vmem_limit_bytes=vmem_limit),
        )(emb_p, params.w_pad, params.bias_pad)
        # Only pay the slice copy if padding is actually nonzero.
        logits = logits_pad if (N_pad == N and V_pad == V) else logits_pad[:N, :V]
        return logits.reshape(B, T, V), None

    tgt = predictions.reshape(N).astype(jnp.int32)
    tgt_p = jnp.pad(tgt, (0, N_pad - N)).reshape(N_pad, 1)

    scratch = [pltpu.VMEM((n_tile, 1), jnp.float32),   # running max m
               pltpu.VMEM((n_tile, 1), jnp.float32)]   # running sum l
    cparams = pltpu.CompilerParams(
        dimension_semantics=("parallel", "arbitrary"),
        vmem_limit_bytes=vmem_limit)

    if return_logits:
        logits_pad, lse, tl = pl.pallas_call(
            _train_kernel,
            out_shape=(jax.ShapeDtypeStruct((N_pad, V_pad), logits_dtype),
                       jax.ShapeDtypeStruct((N_pad, 1), jnp.float32),
                       jax.ShapeDtypeStruct((N_pad, 1), jnp.float32)),
            grid_spec=pltpu.PrefetchScalarGridSpec(
                num_scalar_prefetch=0, grid=grid,
                in_specs=[emb_spec, w_spec, b_spec, row_spec],
                out_specs=(logits_spec, row_spec, row_spec),
                scratch_shapes=scratch),
            compiler_params=cparams,
        )(emb_p, params.w_pad, params.bias_pad, tgt_p)
        logits = logits_pad if (N_pad == N and V_pad == V) else logits_pad[:N, :V]
    else:
        lse, tl = pl.pallas_call(
            _loss_only_kernel,
            out_shape=(jax.ShapeDtypeStruct((N_pad, 1), jnp.float32),
                       jax.ShapeDtypeStruct((N_pad, 1), jnp.float32)),
            grid_spec=pltpu.PrefetchScalarGridSpec(
                num_scalar_prefetch=0, grid=grid,
                in_specs=[emb_spec, w_spec, b_spec, row_spec],
                out_specs=(row_spec, row_spec),
                scratch_shapes=scratch),
            compiler_params=cparams,
        )(emb_p, params.w_pad, params.bias_pad, tgt_p)
        logits = None

    loss = jnp.mean(lse[:N, 0] - tl[:N, 0])
    return logits, loss


# TODO(synk): BigramModel.generate (autoregressive multinomial sampling loop) is a
# host-side loop around forward(); not implemented as a kernel.


if __name__ == "__main__":
    # Small synthetic shapes (real cl100k vocab ~100k; 512 keeps the test tiny).
    VOCAB, EMBED = 512, 32
    B, T = 2, 8
    N = B * T

    key = jax.random.PRNGKey(0)
    k_tab, k_w, k_b, k_ids, k_tgt = jax.random.split(key, 5)

    # Deterministic init mimicking PyTorch defaults:
    #   Embedding ~ N(0, 1); Linear ~ U(-1/sqrt(in), 1/sqrt(in)).
    token_table = jax.random.normal(k_tab, (VOCAB, EMBED), jnp.float32)
    bound = 1.0 / (EMBED ** 0.5)
    w = jax.random.uniform(k_w, (VOCAB, EMBED), jnp.float32, -bound, bound)
    bias = jax.random.uniform(k_b, (VOCAB,), jnp.float32, -bound, bound)

    input_seq = jax.random.randint(k_ids, (B, T), 0, VOCAB, jnp.int32)
    targets = jax.random.randint(k_tgt, (B, T), 0, VOCAB, jnp.int32)

    # One-time weight prep.  v_tile=128 forces a 4-step V grid so the streaming
    # logsumexp and in-kernel target gather are exercised.
    params = prepare_bigram_params(token_table, w, bias, v_tile=128)

    # Inference path (predictions=None).
    logits_btv, loss_none = bigram_forward(params, input_seq)
    jax.block_until_ready(logits_btv)
    assert logits_btv.shape == (B, T, VOCAB) and loss_none is None

    # Training path with logits returned (PyTorch semantics).
    logits_flat, loss = bigram_forward(params, input_seq, targets)
    jax.block_until_ready((logits_flat, loss))
    assert logits_flat.shape == (N, VOCAB)

    # Loss-only training path: no logits HBM writeback at all.
    no_logits, loss_fast = bigram_forward(params, input_seq, targets,
                                          return_logits=False)
    jax.block_until_ready(loss_fast)
    assert no_logits is None

    # Reference with the same dtype policy (bf16 matmul, f32 accumulate / CE).
    ids = input_seq.reshape(-1)
    emb_ref = token_table[ids]
    logits_ref = jnp.dot(emb_ref.astype(jnp.bfloat16), w.T.astype(jnp.bfloat16),
                         preferred_element_type=jnp.float32) + bias
    logp = jax.nn.log_softmax(logits_ref, axis=-1)
    loss_ref = -jnp.mean(logp[jnp.arange(N), targets.reshape(-1)])

    assert jnp.allclose(logits_flat, logits_ref, atol=2e-3, rtol=2e-3)
    assert jnp.allclose(logits_btv.reshape(N, VOCAB), logits_ref,
                        atol=2e-3, rtol=2e-3)
    assert jnp.allclose(loss, loss_ref, atol=2e-3, rtol=2e-3)
    assert jnp.allclose(loss_fast, loss, atol=1e-4, rtol=1e-4)

    # Loose sanity check against a pure-f32 reference (semantics check only).
    logits_f32 = emb_ref @ w.T + bias
    loss_f32 = -jnp.mean(jax.nn.log_softmax(logits_f32, -1)
                         [jnp.arange(N), targets.reshape(-1)])
    assert jnp.allclose(loss, loss_f32, atol=5e-2, rtol=5e-2)

    print("KERNEL_OK")
</pallas_src>

<mosaic_0001>
module attributes {stable_mosaic.version = 11 : i64} {
  func.func @_logits_kernel(%arg0: i32, %arg1: i32, %arg2: memref<16x32xbf16, #tpu.memory_space<vmem>>, %arg3: memref<32x128xbf16, #tpu.memory_space<vmem>>, %arg4: memref<1x128xf32, #tpu.memory_space<vmem>>, %arg5: memref<16x128xf32, #tpu.memory_space<vmem>>) attributes {dimension_semantics = [#tpu.dimension_semantics<parallel>, #tpu.dimension_semantics<parallel>], iteration_bounds = array<i64: 1, 4>, scalar_prefetch = 0 : i64, scratch_operands = 0 : i64, tpu.core_type = #tpu.core_type<tc>, window_params = [{transform_indices = @transform_0, window_bounds = array<i64: 16, 32>}, {transform_indices = @transform_1, window_bounds = array<i64: 32, 128>}, {transform_indices = @transform_2, window_bounds = array<i64: 1, 128>}, {transform_indices = @transform_3, window_bounds = array<i64: 16, 128>}]} {
    %c0 = arith.constant 0 : index
    %c0_0 = arith.constant 0 : index
    %0 = vector.load %arg2[%c0, %c0_0] : memref<16x32xbf16, #tpu.memory_space<vmem>>, vector<16x32xbf16>
    %c0_1 = arith.constant 0 : index
    %c0_2 = arith.constant 0 : index
    %1 = vector.load %arg3[%c0_1, %c0_2] : memref<32x128xbf16, #tpu.memory_space<vmem>>, vector<32x128xbf16>
    %cst = arith.constant dense<0.000000e+00> : vector<16x128xf32>
    %2 = tpu.matmul %0, %1, %cst {dimension_numbers = #tpu.dot_dimension_numbers<[1], [0], [0], [1], [0, 0, 1, 1], [], []>} : vector<16x32xbf16>, vector<32x128xbf16>, vector<16x128xf32> -> vector<16x128xf32>
    %c0_3 = arith.constant 0 : index
    %c0_4 = arith.constant 0 : index
    %3 = vector.load %arg4[%c0_3, %c0_4] : memref<1x128xf32, #tpu.memory_space<vmem>>, vector<1x128xf32>
    %4 = vector.broadcast %3 : vector<1x128xf32> to vector<16x128xf32>
    %5 = arith.addf %2, %4 : vector<16x128xf32>
    %c0_5 = arith.constant 0 : index
    %c0_6 = arith.constant 0 : index
    %6 = vector.load %arg5[%c0_5, %c0_6] : memref<16x128xf32, #tpu.memory_space<vmem>>, vector<16x128xf32>
    tpu.vector_store %arg5[%c0_5, %c0_6], %5 {strides = array<i32>} : memref<16x128xf32, #tpu.memory_space<vmem>>, vector<16x128xf32>,
    return
  }
  func.func @transform_0(%arg0: i32, %arg1: i32) -> (i32, i32) {
    %c0_i32 = arith.constant 0 : i32
    %c0_i32_0 = arith.constant 0 : i32
    return %arg0, %c0_i32 : i32, i32
  }
  func.func @transform_1(%arg0: i32, %arg1: i32) -> (i32, i32) {
    %c0_i32 = arith.constant 0 : i32
    %c0_i32_0 = arith.constant 0 : i32
    return %c0_i32, %arg1 : i32, i32
  }
  func.func @transform_2(%arg0: i32, %arg1: i32) -> (i32, i32) {
    %c0_i32 = arith.constant 0 : i32
    %c0_i32_0 = arith.constant 0 : i32
    return %c0_i32, %arg1 : i32, i32
  }
  func.func @transform_3(%arg0: i32, %arg1: i32) -> (i32, i32) {
    %c0_i32 = arith.constant 0 : i32
    return %arg0, %arg1 : i32, i32
  }
}

</mosaic_0001>

<bundles_post_ra>
// kernel: tpu_custom_call.1
= control target key start
LH: loop header
LB: loop body
LE: loop exit
PB: predicated region body
PF: predicated region fallthrough
CT: control target
= control target key end

     0   :  { %8 = vsyncpa [#allocation3], 0  ;;  %s937_s0 = inlined_call_operand.hbm [shape: bf16[16,32], index: 0, kind: input, shape index: {}]   ;;  %s938_s1 = inlined_call_operand.hbm [shape: bf16[32,512], index: 1, kind: input, shape index: {}]   ;;  %s939_s2 = inlined_call_operand.hbm [shape: f32[1,512], index: 2, kind: input, shape index: {}]   ;;  %s940_s3 = inlined_call_operand.hbm [shape: f32[16,512], index: 3, kind: output, shape index: {}]  }
   0x1   :  { %9 = vsyncpa [#allocation6], 0 }
   0x2   :  { %11 = vsyncpa [#allocation6 + $0x1], 0 }
   0x3   :  { %12 = vsyncpa [#allocation4], 0 }
   0x4   :  { %14 = vsyncpa [#allocation4 + $0x1], 0  ;;  %s763_s12 = smov 0   ;;  %s765_s13 = smov 0  }
   0x5   :  { %s767_s14 = smov 0   ;;  %s769_s15 = smov 0  }
   0x6   :  { %s771_s16 = smov 0   ;;  %s773_s17 = smov 0  }
   0x7 LB: > { %s29_s18 = sadd.s32 1, %s730_s16  ;;  %s65_s19 = sadd.s32 1, %s722_s14  ;;  %s734_s17 = sphi %s773_s17, %s20_s17   ;;  %s730_s16 = sphi %s771_s16, %s951_s16   ;;  %s726_s15 = sphi %s769_s15, %s950_s15   ;;  %s722_s14 = sphi %s767_s14, %s949_s14   ;;  %s718_s13 = sphi %s765_s13, %s948_s13   ;;  %s714_s12 = sphi %s763_s12, %s947_s12  }
   0x8   : > { %p30_p0 = scmp.ge.s32.totalorder %s29_s18, 4  ;;  %p72_p1 = scmp.ne.s32.totalorder %s722_s14, %s718_s13 }
   0x9   : > { %p73_p2 = scmp.eq.s32.totalorder %s734_s17, 0  ;;  %p499_p5 = scmp.lt.s32.totalorder %s734_s17, 4 }
   0xa   : > { %s953_s18 = smov (%p30_p0, %s29_s18), 0  ;;  %s173_s22 = sand.u32 1, %s734_s17  }
   0xb   : > { %p803_p3 = por %p73_p2, %p72_p1  ;;  %s62_s21 = ssub.s32 %s730_s16, %s953_s18 }
   0xc   : > { %p63_p4 = scmp.eq.s32.totalorder %s62_s21, 0  ;;  %s175_s23 = sand.u32 1, %s722_s14  }
   0xd   : > { %s447_s25 = sshll.u32 %s175_s23, 4  ;;  %s448_s26 = sshll.u32 %s730_s16, 2 }
   0xe   : > { %s813_s24 = scalar_select %p63_p4, %s722_s14, %s65_s19  }
   0xf   : > { %s181_s29 = scalar_lea.hbm %s938_s1, %s448_s26  ;;  %s177_s30 = scalar_lea.vmem [#allocation5], %s447_s25 }
  0x10   : > { %s184_s4 = sshll.u32 %s177_s30, 4  ;;  %s182_s5 = sshll.u32 %s181_s29, 4  ;;  %s185_s4 = int_to_ptr.vmem [resolvable:$true] %s184_s4  ;;  %s183_s5 = int_to_ptr.hbm [resolvable:$true] %s182_s5 }
  0x11   : > { %p823_p6 = pnand %p499_p5, %p803_p3  ;;  %s827_s7 = scalar_lea.sflag [#allocation6], %s173_s22 }
  0x12   : > { %s736_s8 = smov 256   ;;  %s737_s9 = smov 64  }
  0x13   : > { %s738_s10 = smov 4   ;;  %s835_s11 = sadd.s32 4294967295, %s734_s17  }
  0x14   : > { %490 = dma.hbm_to_vmem [thread:$0]  (!%p823_p6), %s183_s5, 256, %s185_s4, %s827_s7, %s736_s8, %s737_s9, %s738_s10  }
  0x15   : > { %s443_s19 = sadd.s32 4294967294, %s734_s17   ;;  %p78_p7 = scmp.ne.s32.totalorder %s718_s13, %s714_s12 }
  0x16   : > { %p79_p8 = scmp.eq.s32.totalorder %s835_s11, 0  ;;  %p130_p9 = scmp.eq.s32.totalorder %s835_s11, 3 }
  0x17   : > { %p136_p10 = scmp.eq.s32.totalorder %s443_s19, 3  ;;  %p444_p12 = scmp.ge.s32.totalorder %s734_s17, 1 }
  0x18   : > { %p844_p11 = por %p79_p8, %p78_p7  ;;  %p852_p13 = por %p130_p9, %p72_p1 }
  0x19   : > { %p856_p0 = por %p136_p10, %p78_p7  ;;  %p143_p2 = scmp.lt.s32.totalorder %s734_s17, 5 }
  0x1a   : > { %s157_s27 = sshll.u32 %s937_s0, 4  ;;  %s739_s29 = smov [#allocation2]   ;;  %s158_s27 = int_to_ptr.hbm [resolvable:$true] %s157_s27 }
  0x1b   : > { %p864_p3 = pnand %p444_p12, %p143_p2  ;;  %s159_s30 = sshll.u32 %s739_s29, 4  ;;  %s160_s30 = int_to_ptr.vmem [resolvable:$true] %s159_s30 }
  0x1c   : > { %s200_s8 = scalar_lea.hbm %s939_s2, %s730_s16  ;;  %s197_s19 = scalar_lea.vmem [#allocation7], %s175_s23 }
  0x1d   : > { %p483_p1 = pneg %p864_p3  ;;  %s204_s25 = sshll.u32 %s197_s19, 4  ;;  %s205_s25 = int_to_ptr.vmem [resolvable:$true] %s204_s25 }
  0x1e   : > { %s202_s26 = sshll.u32 %s200_s8, 4  ;;  %213 = sbr.rel (%p864_p3) target bundleno = 189 (0xbd), region = 32  ;;  %s203_s26 = int_to_ptr.hbm [resolvable:$true] %s202_s26 }
  0x1f   : > { %p484_p4 = pnand %p483_p1, %p79_p8 }
  0x20   : > { %493 = dma.hbm_to_vmem [thread:$0]  (!%p823_p6), %s203_s26, 16, %s205_s25, %s827_s7  }
  0x21   : > { %486 = dma.hbm_to_vmem [thread:$0]  (!%p484_p4), %s158_s27, 128, %s160_s30, [#allocation3], %s737_s9, %s737_s9, %s738_s10  }
  0x23   : > { %701 = dma.done.wait (%p79_p8), [#allocation3], 128  }
  0x24   : > { %703 = vsyncadd (%p79_p8), [#allocation3], 4294967168  ;;  %s220_s23 = sand.u32 1, %s835_s11   ;;  %s892_s29 = sand.u32 1, %s718_s13  }
  0x25   : > { %s451_s4 = sshll.u32 %s892_s29, 4  ;;  %s221_s9 = scalar_lea.sflag [#allocation6], %s220_s23 }
  0x26   : > { %s224_s6 = scalar_lea.vmem [#allocation5], %s451_s4 }
  0x27   : > { %705 = dma.done.wait (%p844_p11), %s221_s9, 272  }
  0x28   : > { %707 = vsyncadd (%p844_p11), %s221_s9, 4294967024  ;;  %v472_v0 = vld [vmem:[%s224_s6 + $0x8] sm:$0xff]  ;;  %s233_s7 = scalar_lea.vmem [#allocation7], %s892_s29  ;;  %v471_v1 = vld [vmem:[%s224_s6] sm:$0xff]  ;;  %vm291_vm0 = vcmask 261120   ;;  %s467_s10 = sshll.u32 %s726_s15, 3 }
  0x29   : > { %301 = vmatpush.bf16.msra.mxu0 %v472_v0  ;;  %v470_v2 = vld [vmem:[#allocation2] sm:$0xff]  ;;  %s325_s20 = scalar_lea.hbm %s940_s3, %s467_s10  ;;  %s260_s28 = scalar_lea.vmem [#allocation8], %s451_s4 }
  0x2a   : > { %v557_v3 = vld [vmem:[%s233_s7] ss:$0 sm:$0xff]  ;;  %s326_s30 = sshll.u32 %s260_s28, 4  ;;  %s328_s5 = sshll.u32 %s325_s20, 4  ;;  %s327_s30 = int_to_ptr.vmem [resolvable:$true] %s326_s30  ;;  %s329_s5 = int_to_ptr.hbm [resolvable:$true] %s328_s5 }
  0x2b   : > { %s312_s8 = scalar_lea.sflag [#allocation4], %s892_s29  ;;  %s662_s19 = sshra.s32 %s329_s5, 4  ;;  %s663_s19 = int_to_ptr.hbm [resolvable:$true] %s662_s19 }
  0x2c   : > { %s664_s15 = scalar_lea.hbm %s663_s19, 16  ;;  %s668_s23 = scalar_lea.hbm %s940_s3, 64 }
  0x2d   : > { %302 = vmatpush.bf16.msra.mxu0 %v471_v1  ;;  %p665_p5 = scmp.ne.s32.totalorder %s663_s19, %s664_s15  ;;  %p669_p8 = scmp.lt.s32.totalorder %s663_s19, %s940_s3 }
  0x2e   : > { %p670_p9 = scmp.lt.s32.totalorder %s668_s23, %s664_s15 }
  0x2f   : > { %p666_p6 = pnand %p665_p5, %p852_p13 }
  0x30   : > { %465 = vmatmul.msk.bf16.vlgmr.msra.gmra.mxu0 %vm291_vm0, %v470_v2  ;;  %p671_p10 = por %p670_p9, %p669_p8 }
  0x31   : > { %p667_p7 = pneg %p666_p6 }
  0x33   : > { %p672_p11 = pnand %p671_p10, %p667_p7 }
  0xad   : > { %v304_v4 = vpop.f32.mrf.mxu0 }
  0xae   : > { %v305_v5 = vadd.f32 %v557_v3, %v304_v4 }
  0xb0   : > { %309 = vst [vmem:[%s260_s28] sm:$0xff] %v305_v5 }
  0xb5   : > { %v306_v6 = vpop.f32.mrf.mxu0 }
  0xb6   : > { %v307_v7 = vadd.f32 %v557_v3, %v306_v6 }
  0xb8   : > { %310 = vst [vmem:[%s260_s28 + $0x8] sm:$0xff] %v307_v7 }
  0xb9   : > { %675 = shalt.err (!%p672_p11)
}
  0xba   : > { %s740_s29 = smov 128   ;;  %s741_s6 = smov 512  }
  0xbb   : > { %s742_s7 = smov 8  }
  0xbc   : > { %481 = dma.vmem_to_hbm [thread:$0]  (%p852_p13), %s327_s30, 256, %s329_s5, %s312_s8, %s740_s29, %s741_s6, %s742_s7  }
  0xbd PF: > { %p501_p12 = scmp.ge.s32.totalorder %s734_s17, 2  ;;  %s343_s10 = sand.u32 1, %s714_s12  }
  0xbe   : > { %s344_s11 = scalar_lea.sflag [#allocation4], %s343_s10 }
  0xbf   : > { %p495_p2 = pnand %p501_p12, %p856_p0 }
  0xc1   : > { %p496_p3 = pneg %p495_p2 }
  0xc3   : > { %709 = dma.done.wait (%p496_p3), %s344_s11, 256  }
  0xc4   : > { %711 = vsyncadd (%p496_p3), %s344_s11, 4294967040  ;;  %s20_s17 = sadd.s32 1, %s734_s17   ;;  %s947_s12 = smov %s718_s13 }
  0xc5   : > { %p17_p1 = scmp.ge.s32.totalorder %s20_s17, 6   ;;  %s948_s13 = smov %s722_s14 }
  0xc6   : > { %s949_s14 = smov %s813_s24  ;;  %s950_s15 = smov %s730_s16 }
  0xc7   : > { %s951_s16 = smov %s953_s18  ;;  %19 = sbr.rel (!%p17_p1) target bundleno = 7 (0x7), region = 94 }
  0xcc   :  { %350 = vsyncpa [#allocation3], 1 }
  0xcd   :  { %352 = vsyncpa [#allocation3 + $0x1], 1 }
  0xce   :  { %353 = vsyncpa [#allocation6], 1 }
  0xcf   :  { %355 = vsyncpa [#allocation6 + $0x1], 1 }
  0xd0   :  { %356 = vsyncpa [#allocation4], 1 }
  0xd1   :  { %358 = vsyncpa [#allocation4 + $0x1], 1 }

</bundles_post_ra>
